<compile_context>
chip_gen: v5e
topology: v5e:2x2
jax: 0.10.0
libtpu: 0.0.40
codegen_flags: <defaults>
</compile_context>

<pallas_src>
import math

import jax
import jax.numpy as jnp
from jax import lax
from jax.experimental import pallas as pl
from jax.experimental.pallas import tpu as pltpu

_BCE_EPS = 1e-7
# clip(sigmoid(z), eps, 1-eps) == sigmoid(clip(z, -zmax, zmax))
_BCE_ZMAX = float(math.log((1.0 - _BCE_EPS) / _BCE_EPS))   # ~16.118
_AREA_EPS = 1e-9
_LANES = 128


def _softplus(z):
    return jnp.maximum(z, 0.0) + jnp.log(1.0 + jnp.exp(-jnp.abs(z)))


def _bce_with_logits(z, t):
    """BCELoss(clip_by_tensor(sigmoid(z), eps, 1-eps), t) from logits."""
    zc = jnp.clip(z, -_BCE_ZMAX, _BCE_ZMAX)
    return _softplus(zc) - t * zc


def _pick_tile_s(n_sub, attrs, pred_itemsize, yt_itemsize,
                 budget_bytes=8 * 1024 * 1024):
    """Largest sublane tile (divisor of n_sub, full-extent or multiple of 8)
    whose double-buffered pred+y_true blocks stay inside a conservative VMEM
    budget.  For every real YOLO level this returns n_sub itself."""
    per_row = attrs * _LANES * (pred_itemsize + yt_itemsize)
    best = None
    for ts in range(1, n_sub + 1):
        if n_sub % ts:
            continue
        if ts != n_sub and ts % 8:          # keep sub-tiles sublane-aligned
            continue
        if 2 * ts * per_row <= budget_bytes:
            best = ts
    return best if best is not None else n_sub


def _make_yolo_loss_kernel(num_classes, num_anchors, tile_s, in_w,
                           n_valid_cells, padded):
    nc = num_classes
    na = num_anchors
    inv_w = 1.0 / float(in_w)
    cells_per_tile = tile_s * _LANES

    def kernel(anchor_w_ref, pred_ref, yt_ref, out_ref,
               acc_n, acc_reg, acc_cls, acc_conf):
        g = pl.program_id(0)          # batch*anchor index   ("parallel")
        s = pl.program_id(1)          # sublane-tile index   ("arbitrary")

        @pl.when(s == 0)
        def _init():
            acc_n[...] = jnp.zeros_like(acc_n)
            acc_reg[...] = jnp.zeros_like(acc_reg)
            acc_cls[...] = jnp.zeros_like(acc_cls)
            acc_conf[...] = jnp.zeros_like(acc_conf)

        shp = (tile_s, _LANES)
        sub = lax.broadcasted_iota(jnp.int32, shp, 0)
        lane = lax.broadcasted_iota(jnp.int32, shp, 1)
        flat = s * cells_per_tile + sub * _LANES + lane    # flattened H*W index

        if padded:
            valid = (flat < n_valid_cells).astype(jnp.float32)
        else:
            valid = None

        conf_z = pred_ref[0, 4, :, :].astype(jnp.float32)
        obj = yt_ref[0, 4, :, :] > 0.5          # (== 1.0 in the source)
        obj_mask = obj.astype(jnp.float32)
        has_pos = jnp.sum(obj_mask) > 0.0       # one XLU reduce gates the tile

        @pl.when(has_pos)
        def _positive_tile():
            x = jax.nn.sigmoid(pred_ref[0, 0, :, :].astype(jnp.float32))
            y = jax.nn.sigmoid(pred_ref[0, 1, :, :].astype(jnp.float32))
            h = jax.nn.sigmoid(pred_ref[0, 3, :, :].astype(jnp.float32))

            t_x = yt_ref[0, 0, :, :]
            t_y = yt_ref[0, 1, :, :]
            t_w = yt_ref[0, 2, :, :]
            t_h = yt_ref[0, 3, :, :]

            # grid coords from the flat index.  (flat + 0.5)/W keeps floor()
            # exact for non-power-of-two W (20/40/80) despite f32 rounding.
            flat_f = flat.astype(jnp.float32)
            grid_y = jnp.floor((flat_f + 0.5) * inv_w)
            grid_x = flat_f - grid_y * float(in_w)
            anchor_w = anchor_w_ref[g % na]     # scalar from SMEM prefetch

            # Faithful to the source: forward calls get_pred_boxes(l, x, y, h,
            # w, ...) (w/h swapped) and the cat() repeats pred_boxes_w, so the
            # box reaching box_iou is (px, py, pw, pw) with
            # pw = (sigmoid(pred[...,3])*2)^2 * anchor_w.
            pb_x = x * 2.0 - 0.5 + grid_x
            pb_y = y * 2.0 - 0.5 + grid_y
            pb_w = (h * 2.0) ** 2 * anchor_w

            half = pb_w * 0.5
            b1_min_x, b1_max_x = pb_x - half, pb_x + half
            b1_min_y, b1_max_y = pb_y - half, pb_y + half
            b2_min_x, b2_max_x = t_x - t_w * 0.5, t_x + t_w * 0.5
            b2_min_y, b2_max_y = t_y - t_h * 0.5, t_y + t_h * 0.5

            inter_w = jnp.maximum(
                jnp.minimum(b1_max_x, b2_max_x) - jnp.maximum(b1_min_x, b2_min_x), 0.0)
            inter_h = jnp.maximum(
                jnp.minimum(b1_max_y, b2_max_y) - jnp.maximum(b1_min_y, b2_min_y), 0.0)
            inter_area = inter_w * inter_h
            union_area = pb_w * pb_w + t_w * t_h - inter_area
            enc_w = jnp.maximum(
                jnp.maximum(b1_max_x, b2_max_x) - jnp.minimum(b1_min_x, b2_min_x), 0.0)
            enc_h = jnp.maximum(
                jnp.maximum(b1_max_y, b2_max_y) - jnp.minimum(b1_min_y, b2_min_y), 0.0)
            enc_area = enc_w * enc_h

            inv_union = pl.reciprocal(union_area + _AREA_EPS, approx=True)
            inv_enc = pl.reciprocal(enc_area + _AREA_EPS, approx=True)
            iou = inter_area * inv_union
            giou = iou - (enc_area - union_area) * inv_enc

            # Per-class BCE, one (tile_s, 128) plane live at a time.
            # TODO(synk): the source calls self.BCELoss() with no arguments
            # (would crash); this implements the intended per-class BCE over
            # positive cells.  label_smoothing/threshold are stored but never
            # applied, matching the source.
            def cls_plane(c):
                z = pred_ref[0, 5 + c, :, :].astype(jnp.float32)
                t = yt_ref[0, 5 + c, :, :]
                # targets are exactly 0/1: clamp once at the end instead of
                # clipping the logits per element.
                return jnp.minimum(_softplus(z) - t * z, _BCE_ZMAX)

            if nc <= 16:
                cls_per_cell = cls_plane(0)
                for c in range(1, nc):
                    cls_per_cell = cls_per_cell + cls_plane(c)
            else:
                cls_per_cell = lax.fori_loop(
                    0, nc, lambda c, acc: acc + cls_plane(c),
                    jnp.zeros(shp, jnp.float32), unroll=4)

            tobj = jnp.where(obj, jnp.maximum(giou, 0.0), 0.0)
            conf_bce = _bce_with_logits(conf_z, tobj)
            if padded:
                conf_bce = conf_bce * valid

            acc_n[...] += obj_mask
            acc_reg[...] += (1.0 - giou) * obj_mask
            acc_cls[...] += cls_per_cell * obj_mask
            acc_conf[...] += conf_bce

        @pl.when(jnp.logical_not(has_pos))
        def _negative_tile():
            # tobj == 0 everywhere: BCE collapses to softplus(clip(z)).
            conf_bce = _softplus(jnp.clip(conf_z, -_BCE_ZMAX, _BCE_ZMAX))
            if padded:
                conf_bce = conf_bce * valid
            acc_conf[...] += conf_bce

        @pl.when(s == pl.num_programs(1) - 1)
        def _finalize():
            row = lax.broadcasted_iota(jnp.int32, (1, 8, _LANES), 1)
            out_ref[...] = (jnp.where(row == 0, jnp.sum(acc_n[...]), 0.0)
                            + jnp.where(row == 1, jnp.sum(acc_reg[...]), 0.0)
                            + jnp.where(row == 2, jnp.sum(acc_cls[...]), 0.0)
                            + jnp.where(row == 3, jnp.sum(acc_conf[...]), 0.0))

    return kernel


class YoloLossPallas:
    def __init__(self, anchors, num_classes, input_shape,
                 anchors_mask=((6, 7, 8), (3, 4, 5), (0, 1, 2)),
                 label_smoothing=0):
        self.anchors = [list(a) for a in anchors]
        self.num_classes = num_classes
        self.bbox_attrs = 5 + num_classes
        self.input_shape = input_shape
        self.anchors_mask = anchors_mask
        self.label_smoothing = label_smoothing   # stored, never applied (as in source)
        self.threshold = 4
        self.balance = [0.4, 1.0, 4]
        self.box_ratio = 0.05
        self.obj_ratio = 1 * (input_shape[0] * input_shape[1]) / 640 ** 2
        self.cls_ratio = 0.5 * (num_classes / 80)

    def __call__(self, l, input, y_true, *, y_true_channel_first=True):
        bs, chans, in_h, in_w = input.shape
        na = len(self.anchors_mask[l])
        A = self.bbox_attrs
        assert chans == na * A
        G = bs * na
        HW = in_h * in_w
        N = G * HW                               # real (un-padded) cell count

        stride_w = self.input_shape[1] / in_w
        # Only the scaled anchor *widths* ever reach box_iou (see kernel comment).
        anchor_w_l = jnp.asarray(
            [self.anchors[i][0] / stride_w for i in self.anchors_mask[l]],
            dtype=jnp.float32)

        # Lane-dense spatial layout: flatten H*W and pad to a multiple of 128.
        S = pl.cdiv(HW, _LANES)
        HWp = S * _LANES
        padded = HWp != HW

        # Zero-copy view of the contiguous NCHW prediction; bf16 stays bf16 in
        # HBM (halves read traffic), upcast happens inside the kernel.
        pred = input.reshape(G, A, HW)
        if padded:
            pred = jnp.pad(pred, ((0, 0), (0, 0), (0, HWp - HW)))
        pred = pred.reshape(G, A, S, _LANES)

        # Targets stay f32 (bf16 would quantise box centres/sizes on 80x80).
        # Channel-first (bs, na, A, H, W) avoids any HBM transpose; the
        # attribute-last PyTorch layout is still accepted via the flag.
        yt = y_true.astype(jnp.float32)
        if not y_true_channel_first:
            # TODO(synk): produce targets channel-first upstream to avoid this
            # whole-array HBM transpose.
            yt = jnp.transpose(yt, (0, 1, 4, 2, 3))
        yt = yt.reshape(G, A, HW)
        if padded:
            yt = jnp.pad(yt, ((0, 0), (0, 0), (0, HWp - HW)))
        yt = yt.reshape(G, A, S, _LANES)

        tile_s = _pick_tile_s(S, A,
                              jnp.dtype(pred.dtype).itemsize,
                              jnp.dtype(yt.dtype).itemsize)
        n_s_tiles = S // tile_s

        kernel = _make_yolo_loss_kernel(self.num_classes, na, tile_s, in_w,
                                        HW, padded)
        blk = (1, A, tile_s, _LANES)
        partials = pl.pallas_call(
            kernel,
            out_shape=jax.ShapeDtypeStruct((G, 8, _LANES), jnp.float32),
            grid_spec=pltpu.PrefetchScalarGridSpec(
                num_scalar_prefetch=1,
                grid=(G, n_s_tiles),
                in_specs=[
                    pl.BlockSpec(blk, lambda g, s, anc: (g, 0, s, 0)),
                    pl.BlockSpec(blk, lambda g, s, anc: (g, 0, s, 0)),
                ],
                out_specs=pl.BlockSpec((1, 8, _LANES),
                                       lambda g, s, anc: (g, 0, 0)),
                scratch_shapes=[pltpu.VMEM((tile_s, _LANES), jnp.float32)
                                for _ in range(4)],
            ),
            compiler_params=pltpu.CompilerParams(
                dimension_semantics=("parallel", "arbitrary"),
                vmem_limit_bytes=32 * 1024 * 1024,
            ),
        )(anchor_w_l, pred, yt)

        # (G, 4) per-(batch, anchor) partial sums -> 4 scalars (cheap, plain JAX)
        totals = jnp.sum(partials[:, :4, 0], axis=0)
        n, reg_sum, cls_sum, conf_sum = totals[0], totals[1], totals[2], totals[3]

        safe_n = jnp.maximum(n, 1.0)
        loss_reg = reg_sum / safe_n
        loss_cls = cls_sum / (safe_n * self.num_classes)
        pos_loss = loss_reg * self.box_ratio + loss_cls * self.cls_ratio
        loss_conf = conf_sum / float(N)
        return jnp.where(n != 0.0, pos_loss, 0.0) \
            + loss_conf * self.balance[l] * self.obj_ratio


def _reference_loss(mod, l, input, y_true_cf):
    """Pure-JAX re-implementation (exact divides, clip-form BCE) for self-check.
    y_true_cf is channel-first: (bs, na, A, H, W), f32."""
    bs, _, in_h, in_w = input.shape
    na = len(mod.anchors_mask[l])
    nc = mod.num_classes
    A = mod.bbox_attrs
    stride_w = mod.input_shape[1] / in_w
    aw = jnp.asarray([mod.anchors[i][0] / stride_w for i in mod.anchors_mask[l]],
                     jnp.float32)[None, :, None, None]

    pred = input.reshape(bs, na, A, in_h, in_w).astype(jnp.float32)
    yt = y_true_cf.astype(jnp.float32)

    x = jax.nn.sigmoid(pred[:, :, 0])
    y = jax.nn.sigmoid(pred[:, :, 1])
    h = jax.nn.sigmoid(pred[:, :, 3])
    conf = jax.nn.sigmoid(pred[:, :, 4])
    pcls = jax.nn.sigmoid(pred[:, :, 5:])          # (bs, na, nc, H, W)

    gx = jnp.arange(in_w, dtype=jnp.float32)[None, None, None, :]
    gy = jnp.arange(in_h, dtype=jnp.float32)[None, None, :, None]
    pbx = x * 2.0 - 0.5 + gx
    pby = y * 2.0 - 0.5 + gy
    pbw = (h * 2.0) ** 2 * aw

    tx, ty, tw, th = yt[:, :, 0], yt[:, :, 1], yt[:, :, 2], yt[:, :, 3]
    b1nx, b1xx = pbx - pbw * 0.5, pbx + pbw * 0.5
    b1ny, b1xy = pby - pbw * 0.5, pby + pbw * 0.5
    b2nx, b2xx = tx - tw * 0.5, tx + tw * 0.5
    b2ny, b2xy = ty - th * 0.5, ty + th * 0.5
    iw = jnp.maximum(jnp.minimum(b1xx, b2xx) - jnp.maximum(b1nx, b2nx), 0.0)
    ih = jnp.maximum(jnp.minimum(b1xy, b2xy) - jnp.maximum(b1ny, b2ny), 0.0)
    inter = iw * ih
    union = pbw * pbw + tw * th - inter
    ew = jnp.maximum(jnp.maximum(b1xx, b2xx) - jnp.minimum(b1nx, b2nx), 0.0)
    eh = jnp.maximum(jnp.maximum(b1xy, b2xy) - jnp.minimum(b1ny, b2ny), 0.0)
    enc = ew * eh
    giou = inter / union - (enc - union) / enc

    def bce(p, t):
        eps = 1e-7
        p = jnp.clip(p, eps, 1.0 - eps)
        return -t * jnp.log(p) - (1.0 - t) * jnp.log(1.0 - p)

    obj = yt[:, :, 4] > 0.5
    n = jnp.sum(obj.astype(jnp.float32))
    safe_n = jnp.maximum(n, 1.0)
    loss_reg = jnp.sum(jnp.where(obj, 1.0 - giou, 0.0)) / safe_n
    loss_cls = jnp.sum(jnp.where(obj[:, :, None], bce(pcls, yt[:, :, 5:]), 0.0)) \
        / (safe_n * nc)
    tobj = jnp.where(obj, jnp.maximum(giou, 0.0), 0.0)
    loss_conf = jnp.mean(bce(conf, tobj))
    pos = loss_reg * mod.box_ratio + loss_cls * mod.cls_ratio
    return jnp.where(n != 0.0, pos, 0.0) + loss_conf * mod.balance[l] * mod.obj_ratio


def _check(loss_fn, l, bs, in_h, in_w, key):
    A = loss_fn.bbox_attrs
    na = len(loss_fn.anchors_mask[l])
    x = jax.random.normal(key, (bs, na * A, in_h, in_w), jnp.bfloat16)

    # Channel-first targets (bs, na, A, H, W): no HBM transpose before the kernel.
    y_true = jnp.zeros((bs, na, A, in_h, in_w), jnp.float32)
    boxes = [
        (0, 0, in_h // 3, in_w // 2, 3.4, 2.6, 1.5, 2.0, 0),
        (0, 1, in_h - 3, in_w - 3, 5.2, 5.7, 2.5, 1.2, 1),
        (bs - 1, na - 1, in_h - 2, 1, 1.1, 6.4, 0.8, 0.9, 2),
    ]
    for b, a, gy, gx, cx, cy, w, h, c in boxes:
        attrs = [cx, cy, w, h, 1.0] + [0.0] * loss_fn.num_classes
        attrs[5 + c] = 1.0
        y_true = y_true.at[b, a, :, gy, gx].set(jnp.asarray(attrs, jnp.float32))

    out = jax.block_until_ready(loss_fn(l, x, y_true))
    ref = jax.block_until_ready(_reference_loss(loss_fn, l, x, y_true))
    assert bool(jnp.isfinite(out)), out
    assert bool(jnp.allclose(out, ref, rtol=2e-2, atol=2e-3)), (out, ref)
    return out


if __name__ == "__main__":
    anchors = [[10, 13], [16, 30], [33, 23], [30, 61], [62, 45],
               [59, 119], [116, 90], [156, 198], [373, 326]]
    num_classes = 3
    input_shape = (640, 640)

    loss_fn = YoloLossPallas(anchors, num_classes, input_shape)
    k1, k2 = jax.random.split(jax.random.PRNGKey(0))

    # 8x8 level: H*W=64 -> padded (1,128) lane layout (exercises the valid mask).
    _check(loss_fn, 0, 2, 8, 8, k1)
    # 16x16 level: H*W=256 -> exact (2,128) slabs, no padding path.
    _check(loss_fn, 1, 2, 16, 16, k2)

    print("KERNEL_OK")
</pallas_src>

<mosaic_0001>
module attributes {stable_mosaic.version = 11 : i64} {
  func.func @kernel(%arg0: i32, %arg1: i32, %arg2: memref<3xf32, #tpu.memory_space<smem>>, %arg3: memref<1x8x1x128xbf16, #tpu.memory_space<vmem>>, %arg4: memref<1x8x1x128xf32, #tpu.memory_space<vmem>>, %arg5: memref<1x8x128xf32, #tpu.memory_space<vmem>>, %arg6: memref<1x128xf32, #tpu.memory_space<vmem>>, %arg7: memref<1x128xf32, #tpu.memory_space<vmem>>, %arg8: memref<1x128xf32, #tpu.memory_space<vmem>>, %arg9: memref<1x128xf32, #tpu.memory_space<vmem>>) attributes {dimension_semantics = [#tpu.dimension_semantics<parallel>, #tpu.dimension_semantics<arbitrary>], iteration_bounds = array<i64: 6, 1>, scalar_prefetch = 1 : i64, scratch_operands = 4 : i64, tpu.core_type = #tpu.core_type<tc>, window_params = [{transform_indices = @transform_0, window_bounds = array<i64: 1, 8, 1, 128>}, {transform_indices = @transform_1, window_bounds = array<i64: 1, 8, 1, 128>}, {transform_indices = @transform_2, window_bounds = array<i64: 1, 8, 128>}]} {
    %c0_i32 = arith.constant 0 : i32
    %0 = arith.cmpi eq, %arg1, %c0_i32 : i32
    %1 = arith.extui %0 : i1 to i32
    %c0_i32_0 = arith.constant 0 : i32
    %2 = arith.cmpi ne, %1, %c0_i32_0 : i32
    scf.if %2 {
      %cst_14 = arith.constant 0.000000e+00 : f32
      %37 = vector.broadcast %cst_14 : f32 to vector<1x128xf32>
      %c0_15 = arith.constant 0 : index
      %c0_16 = arith.constant 0 : index
      %38 = vector.load %arg6[%c0_15, %c0_16] : memref<1x128xf32, #tpu.memory_space<vmem>>, vector<1x128xf32>
      tpu.vector_store %arg6[%c0_15, %c0_16], %37 {strides = array<i32>} : memref<1x128xf32, #tpu.memory_space<vmem>>, vector<1x128xf32>,
      %cst_17 = arith.constant 0.000000e+00 : f32
      %39 = vector.broadcast %cst_17 : f32 to vector<1x128xf32>
      %c0_18 = arith.constant 0 : index
      %c0_19 = arith.constant 0 : index
      %40 = vector.load %arg7[%c0_18, %c0_19] : memref<1x128xf32, #tpu.memory_space<vmem>>, vector<1x128xf32>
      tpu.vector_store %arg7[%c0_18, %c0_19], %39 {strides = array<i32>} : memref<1x128xf32, #tpu.memory_space<vmem>>, vector<1x128xf32>,
      %cst_20 = arith.constant 0.000000e+00 : f32
      %41 = vector.broadcast %cst_20 : f32 to vector<1x128xf32>
      %c0_21 = arith.constant 0 : index
      %c0_22 = arith.constant 0 : index
      %42 = vector.load %arg8[%c0_21, %c0_22] : memref<1x128xf32, #tpu.memory_space<vmem>>, vector<1x128xf32>
      tpu.vector_store %arg8[%c0_21, %c0_22], %41 {strides = array<i32>} : memref<1x128xf32, #tpu.memory_space<vmem>>, vector<1x128xf32>,
      %cst_23 = arith.constant 0.000000e+00 : f32
      %43 = vector.broadcast %cst_23 : f32 to vector<1x128xf32>
      %c0_24 = arith.constant 0 : index
      %c0_25 = arith.constant 0 : index
      %44 = vector.load %arg9[%c0_24, %c0_25] : memref<1x128xf32, #tpu.memory_space<vmem>>, vector<1x128xf32>
      tpu.vector_store %arg9[%c0_24, %c0_25], %43 {strides = array<i32>} : memref<1x128xf32, #tpu.memory_space<vmem>>, vector<1x128xf32>,
    } else {
    }
    %3 = tpu.iota {dimensions = array<i32: 0>} : vector<1x128xi32>
    %4 = tpu.iota {dimensions = array<i32: 1>} : vector<1x128xi32>
    %c128_i32 = arith.constant 128 : i32
    %5 = arith.muli %arg1, %c128_i32 : i32
    %c128_i32_1 = arith.constant 128 : i32
    %6 = vector.broadcast %c128_i32_1 : i32 to vector<1x128xi32>
    %7 = arith.muli %3, %6 : vector<1x128xi32>
    %8 = vector.broadcast %5 : i32 to vector<1x128xi32>
    %9 = arith.addi %8, %7 : vector<1x128xi32>
    %10 = arith.addi %9, %4 : vector<1x128xi32>
    %c64_i32 = arith.constant 64 : i32
    %11 = vector.broadcast %c64_i32 : i32 to vector<1x128xi32>
    %12 = arith.cmpi slt, %10, %11 : vector<1x128xi32>
    %13 = arith.extui %12 : vector<1x128xi1> to vector<1x128xi32>
    %14 = arith.sitofp %13 : vector<1x128xi32> to vector<1x128xf32>
    %c0 = arith.constant 0 : index
    %c4 = arith.constant 4 : index
    %c0_2 = arith.constant 0 : index
    %c0_3 = arith.constant 0 : index
    %15 = vector.load %arg3[%c0, %c4, %c0_2, %c0_3] : memref<1x8x1x128xbf16, #tpu.memory_space<vmem>>, vector<1x1x1x128xbf16>
    %16 = vector.shape_cast %15 : vector<1x1x1x128xbf16> to vector<1x128xbf16>
    %17 = arith.extf %16 : vector<1x128xbf16> to vector<1x128xf32>
    %c0_4 = arith.constant 0 : index
    %c4_5 = arith.constant 4 : index
    %c0_6 = arith.constant 0 : index
    %c0_7 = arith.constant 0 : index
    %18 = vector.load %arg4[%c0_4, %c4_5, %c0_6, %c0_7] : memref<1x8x1x128xf32, #tpu.memory_space<vmem>>, vector<1x1x1x128xf32>
    %19 = vector.shape_cast %18 : vector<1x1x1x128xf32> to vector<1x128xf32>
    %cst = arith.constant 5.000000e-01 : f32
    %20 = vector.broadcast %cst : f32 to vector<1x128xf32>
    %21 = arith.cmpf ogt, %19, %20 : vector<1x128xf32>
    %22 = arith.extui %21 : vector<1x128xi1> to vector<1x128xi32>
    %23 = arith.sitofp %22 : vector<1x128xi32> to vector<1x128xf32>
    %24 = vector.shape_cast %23 : vector<1x128xf32> to vector<1x1x128xf32>
    %cst_8 = arith.constant dense<0.000000e+00> : vector<1xf32>
    %25 = vector.multi_reduction <add>, %24, %cst_8 [1, 2] : vector<1x1x128xf32> to vector<1xf32>
    %26 = vector.shape_cast %25 : vector<1xf32> to vector<1x1x1xf32>
    %27 = vector.extract %26[0, 0, 0] : f32 from vector<1x1x1xf32>
    %cst_9 = arith.constant 0.000000e+00 : f32
    %28 = arith.cmpf ogt, %27, %cst_9 : f32
    %29 = arith.extui %28 : i1 to i32
    %c0_i32_10 = arith.constant 0 : i32
    %30 = arith.cmpi ne, %29, %c0_i32_10 : i32
    scf.if %30 {
      %c0_14 = arith.constant 0 : index
      %c0_15 = arith.constant 0 : index
      %c0_16 = arith.constant 0 : index
      %c0_17 = arith.constant 0 : index
      %37 = vector.load %arg3[%c0_14, %c0_15, %c0_16, %c0_17] : memref<1x8x1x128xbf16, #tpu.memory_space<vmem>>, vector<1x1x1x128xbf16>
      %38 = vector.shape_cast %37 : vector<1x1x1x128xbf16> to vector<1x128xbf16>
      %39 = arith.extf %38 : vector<1x128xbf16> to vector<1x128xf32>
      %40 = arith.negf %39 : vector<1x128xf32>
      %41 = math.exp %40 : vector<1x128xf32>
      %cst_18 = arith.constant 1.000000e+00 : f32
      %42 = vector.broadcast %cst_18 : f32 to vector<1x128xf32>
      %43 = arith.addf %42, %41 : vector<1x128xf32>
      %44 = arith.divf %42, %43 : vector<1x128xf32>
      %c0_19 = arith.constant 0 : index
      %c1 = arith.constant 1 : index
      %c0_20 = arith.constant 0 : index
      %c0_21 = arith.constant 0 : index
      %45 = vector.load %arg3[%c0_19, %c1, %c0_20, %c0_21] : memref<1x8x1x128xbf16, #tpu.memory_space<vmem>>, vector<1x1x1x128xbf16>
      %46 = vector.shape_cast %45 : vector<1x1x1x128xbf16> to vector<1x128xbf16>
      %47 = arith.extf %46 : vector<1x128xbf16> to vector<1x128xf32>
      %48 = arith.negf %47 : vector<1x128xf32>
      %49 = math.exp %48 : vector<1x128xf32>
      %cst_22 = arith.constant 1.000000e+00 : f32
      %50 = vector.broadcast %cst_22 : f32 to vector<1x128xf32>
      %51 = arith.addf %50, %49 : vector<1x128xf32>
      %52 = arith.divf %50, %51 : vector<1x128xf32>
      %c0_23 = arith.constant 0 : index
      %c3 = arith.constant 3 : index
      %c0_24 = arith.constant 0 : index
      %c0_25 = arith.constant 0 : index
      %53 = vector.load %arg3[%c0_23, %c3, %c0_24, %c0_25] : memref<1x8x1x128xbf16, #tpu.memory_space<vmem>>, vector<1x1x1x128xbf16>
      %54 = vector.shape_cast %53 : vector<1x1x1x128xbf16> to vector<1x128xbf16>
      %55 = arith.extf %54 : vector<1x128xbf16> to vector<1x128xf32>
      %56 = arith.negf %55 : vector<1x128xf32>
      %57 = math.exp %56 : vector<1x128xf32>
      %cst_26 = arith.constant 1.000000e+00 : f32
      %58 = vector.broadcast %cst_26 : f32 to vector<1x128xf32>
      %59 = arith.addf %58, %57 : vector<1x128xf32>
      %60 = arith.divf %58, %59 : vector<1x128xf32>
      %c0_27 = arith.constant 0 : index
      %c0_28 = arith.constant 0 : index
      %c0_29 = arith.constant 0 : index
      %c0_30 = arith.constant 0 : index
      %61 = vector.load %arg4[%c0_27, %c0_28, %c0_29, %c0_30] : memref<1x8x1x128xf32, #tpu.memory_space<vmem>>, vector<1x1x1x128xf32>
      %62 = vector.shape_cast %61 : vector<1x1x1x128xf32> to vector<1x128xf32>
      %c0_31 = arith.constant 0 : index
      %c1_32 = arith.constant 1 : index
      %c0_33 = arith.constant 0 : index
      %c0_34 = arith.constant 0 : index
      %63 = vector.load %arg4[%c0_31, %c1_32, %c0_33, %c0_34] : memref<1x8x1x128xf32, #tpu.memory_space<vmem>>, vector<1x1x1x128xf32>
      %64 = vector.shape_cast %63 : vector<1x1x1x128xf32> to vector<1x128xf32>
      %c0_35 = arith.constant 0 : index
      %c2 = arith.constant 2 : index
      %c0_36 = arith.constant 0 : index
      %c0_37 = arith.constant 0 : index
      %65 = vector.load %arg4[%c0_35, %c2, %c0_36, %c0_37] : memref<1x8x1x128xf32, #tpu.memory_space<vmem>>, vector<1x1x1x128xf32>
      %66 = vector.shape_cast %65 : vector<1x1x1x128xf32> to vector<1x128xf32>
      %c0_38 = arith.constant 0 : index
      %c3_39 = arith.constant 3 : index
      %c0_40 = arith.constant 0 : index
      %c0_41 = arith.constant 0 : index
      %67 = vector.load %arg4[%c0_38, %c3_39, %c0_40, %c0_41] : memref<1x8x1x128xf32, #tpu.memory_space<vmem>>, vector<1x1x1x128xf32>
      %68 = vector.shape_cast %67 : vector<1x1x1x128xf32> to vector<1x128xf32>
      %69 = arith.sitofp %10 : vector<1x128xi32> to vector<1x128xf32>
      %cst_42 = arith.constant 5.000000e-01 : f32
      %70 = vector.broadcast %cst_42 : f32 to vector<1x128xf32>
      %71 = arith.addf %69, %70 : vector<1x128xf32>
      %cst_43 = arith.constant 1.250000e-01 : f32
      %72 = vector.broadcast %cst_43 : f32 to vector<1x128xf32>
      %73 = arith.mulf %71, %72 : vector<1x128xf32>
      %74 = math.floor %73 : vector<1x128xf32>
      %cst_44 = arith.constant 8.000000e+00 : f32
      %75 = vector.broadcast %cst_44 : f32 to vector<1x128xf32>
      %76 = arith.mulf %74, %75 : vector<1x128xf32>
      %77 = arith.subf %69, %76 : vector<1x128xf32>
      %c3_i32 = arith.constant 3 : i32
      %c0_i32_45 = arith.constant 0 : i32
      %78 = arith.cmpi eq, %c3_i32, %c0_i32_45 : i32
      %c1_i32 = arith.constant 1 : i32
      %79 = arith.select %78, %c1_i32, %c3_i32 : i32
      %80 = arith.remsi %arg0, %79 : i32
      %c0_i32_46 = arith.constant 0 : i32
      %81 = arith.cmpi ne, %80, %c0_i32_46 : i32
      %c0_i32_47 = arith.constant 0 : i32
      %82 = arith.cmpi slt, %80, %c0_i32_47 : i32
      %c0_i32_48 = arith.constant 0 : i32
      %83 = arith.cmpi slt, %79, %c0_i32_48 : i32
      %84 = arith.xori %82, %83 : i1
      %85 = arith.andi %84, %81 : i1
      %86 = arith.addi %80, %79 : i32
      %87 = arith.select %85, %86, %80 : i32
      %88 = arith.index_cast %87 : i32 to index
      %89 = memref.load %arg2[%88] : memref<3xf32, #tpu.memory_space<smem>>
      %cst_49 = arith.constant 2.000000e+00 : f32
      %90 = vector.broadcast %cst_49 : f32 to vector<1x128xf32>
      %91 = arith.mulf %44, %90 : vector<1x128xf32>
      %cst_50 = arith.constant 5.000000e-01 : f32
      %92 = vector.broadcast %cst_50 : f32 to vector<1x128xf32>
      %93 = arith.subf %91, %92 : vector<1x128xf32>
      %94 = arith.addf %93, %77 : vector<1x128xf32>
      %cst_51 = arith.constant 2.000000e+00 : f32
      %95 = vector.broadcast %cst_51 : f32 to vector<1x128xf32>
      %96 = arith.mulf %52, %95 : vector<1x128xf32>
      %cst_52 = arith.constant 5.000000e-01 : f32
      %97 = vector.broadcast %cst_52 : f32 to vector<1x128xf32>
      %98 = arith.subf %96, %97 : vector<1x128xf32>
      %99 = arith.addf %98, %74 : vector<1x128xf32>
      %cst_53 = arith.constant 2.000000e+00 : f32
      %100 = vector.broadcast %cst_53 : f32 to vector<1x128xf32>
      %101 = arith.mulf %60, %100 : vector<1x128xf32>
      %102 = arith.mulf %101, %101 : vector<1x128xf32>
      %103 = vector.broadcast %89 : f32 to vector<1x128xf32>
      %104 = arith.mulf %102, %103 : vector<1x128xf32>
      %cst_54 = arith.constant 5.000000e-01 : f32
      %105 = vector.broadcast %cst_54 : f32 to vector<1x128xf32>
      %106 = arith.mulf %104, %105 : vector<1x128xf32>
      %107 = arith.subf %94, %106 : vector<1x128xf32>
      %108 = arith.addf %94, %106 : vector<1x128xf32>
      %109 = arith.subf %99, %106 : vector<1x128xf32>
      %110 = arith.addf %99, %106 : vector<1x128xf32>
      %cst_55 = arith.constant 5.000000e-01 : f32
      %111 = vector.broadcast %cst_55 : f32 to vector<1x128xf32>
      %112 = arith.mulf %66, %111 : vector<1x128xf32>
      %113 = arith.subf %62, %112 : vector<1x128xf32>
      %cst_56 = arith.constant 5.000000e-01 : f32
      %114 = vector.broadcast %cst_56 : f32 to vector<1x128xf32>
      %115 = arith.mulf %66, %114 : vector<1x128xf32>
      %116 = arith.addf %62, %115 : vector<1x128xf32>
      %cst_57 = arith.constant 5.000000e-01 : f32
      %117 = vector.broadcast %cst_57 : f32 to vector<1x128xf32>
      %118 = arith.mulf %68, %117 : vector<1x128xf32>
      %119 = arith.subf %64, %118 : vector<1x128xf32>
      %cst_58 = arith.constant 5.000000e-01 : f32
      %120 = vector.broadcast %cst_58 : f32 to vector<1x128xf32>
      %121 = arith.mulf %68, %120 : vector<1x128xf32>
      %122 = arith.addf %64, %121 : vector<1x128xf32>
      %123 = arith.minimumf %108, %116 : vector<1x128xf32>
      %124 = arith.maximumf %107, %113 : vector<1x128xf32>
      %125 = arith.subf %123, %124 : vector<1x128xf32>
      %cst_59 = arith.constant 0.000000e+00 : f32
      %126 = vector.broadcast %cst_59 : f32 to vector<1x128xf32>
      %127 = arith.maximumf %125, %126 : vector<1x128xf32>
      %128 = arith.minimumf %110, %122 : vector<1x128xf32>
      %129 = arith.maximumf %109, %119 : vector<1x128xf32>
      %130 = arith.subf %128, %129 : vector<1x128xf32>
      %cst_60 = arith.constant 0.000000e+00 : f32
      %131 = vector.broadcast %cst_60 : f32 to vector<1x128xf32>
      %132 = arith.maximumf %130, %131 : vector<1x128xf32>
      %133 = arith.mulf %127, %132 : vector<1x128xf32>
      %134 = arith.mulf %104, %104 : vector<1x128xf32>
      %135 = arith.mulf %66, %68 : vector<1x128xf32>
      %136 = arith.addf %134, %135 : vector<1x128xf32>
      %137 = arith.subf %136, %133 : vector<1x128xf32>
      %138 = arith.maximumf %108, %116 : vector<1x128xf32>
      %139 = arith.minimumf %107, %113 : vector<1x128xf32>
      %140 = arith.subf %138, %139 : vector<1x128xf32>
      %cst_61 = arith.constant 0.000000e+00 : f32
      %141 = vector.broadcast %cst_61 : f32 to vector<1x128xf32>
      %142 = arith.maximumf %140, %141 : vector<1x128xf32>
      %143 = arith.maximumf %110, %122 : vector<1x128xf32>
      %144 = arith.minimumf %109, %119 : vector<1x128xf32>
      %145 = arith.subf %143, %144 : vector<1x128xf32>
      %cst_62 = arith.constant 0.000000e+00 : f32
      %146 = vector.broadcast %cst_62 : f32 to vector<1x128xf32>
      %147 = arith.maximumf %145, %146 : vector<1x128xf32>
      %148 = arith.mulf %142, %147 : vector<1x128xf32>
      %cst_63 = arith.constant 9.99999971E-10 : f32
      %149 = vector.broadcast %cst_63 : f32 to vector<1x128xf32>
      %150 = arith.addf %137, %149 : vector<1x128xf32>
      %151 = tpu.reciprocal %150 {approx = true} : vector<1x128xf32> -> vector<1x128xf32>
      %cst_64 = arith.constant 9.99999971E-10 : f32
      %152 = vector.broadcast %cst_64 : f32 to vector<1x128xf32>
      %153 = arith.addf %148, %152 : vector<1x128xf32>
      %154 = tpu.reciprocal %153 {approx = true} : vector<1x128xf32> -> vector<1x128xf32>
      %155 = arith.mulf %133, %151 : vector<1x128xf32>
      %156 = arith.subf %148, %137 : vector<1x128xf32>
      %157 = arith.mulf %156, %154 : vector<1x128xf32>
      %158 = arith.subf %155, %157 : vector<1x128xf32>
      %c0_65 = arith.constant 0 : index
      %c5 = arith.constant 5 : index
      %c0_66 = arith.constant 0 : index
      %c0_67 = arith.constant 0 : index
      %159 = vector.load %arg3[%c0_65, %c5, %c0_66, %c0_67] : memref<1x8x1x128xbf16, #tpu.memory_space<vmem>>, vector<1x1x1x128xbf16>
      %160 = vector.shape_cast %159 : vector<1x1x1x128xbf16> to vector<1x128xbf16>
      %161 = arith.extf %160 : vector<1x128xbf16> to vector<1x128xf32>
      %c0_68 = arith.constant 0 : index
      %c5_69 = arith.constant 5 : index
      %c0_70 = arith.constant 0 : index
      %c0_71 = arith.constant 0 : index
      %162 = vector.load %arg4[%c0_68, %c5_69, %c0_70, %c0_71] : memref<1x8x1x128xf32, #tpu.memory_space<vmem>>, vector<1x1x1x128xf32>
      %163 = vector.shape_cast %162 : vector<1x1x1x128xf32> to vector<1x128xf32>
      %cst_72 = arith.constant 0.000000e+00 : f32
      %164 = vector.broadcast %cst_72 : f32 to vector<1x128xf32>
      %165 = arith.maximumf %161, %164 : vector<1x128xf32>
      %166 = math.absf %161 : vector<1x128xf32>
      %cst_73 = arith.constant 0.000000e+00 : f32
      %167 = vector.broadcast %cst_73 : f32 to vector<1x128xf32>
      %168 = arith.subf %167, %166 : vector<1x128xf32>
      %169 = math.exp %168 : vector<1x128xf32>
      %cst_74 = arith.constant 1.000000e+00 : f32
      %170 = vector.broadcast %cst_74 : f32 to vector<1x128xf32>
      %171 = arith.addf %170, %169 : vector<1x128xf32>
      %172 = math.log %171 : vector<1x128xf32>
      %173 = arith.addf %165, %172 : vector<1x128xf32>
      %174 = arith.mulf %163, %161 : vector<1x128xf32>
      %175 = arith.subf %173, %174 : vector<1x128xf32>
      %cst_75 = arith.constant 16.1180954 : f32
      %176 = vector.broadcast %cst_75 : f32 to vector<1x128xf32>
      %177 = arith.minimumf %175, %176 : vector<1x128xf32>
      %c0_76 = arith.constant 0 : index
      %c6 = arith.constant 6 : index
      %c0_77 = arith.constant 0 : index
      %c0_78 = arith.constant 0 : index
      %178 = vector.load %arg3[%c0_76, %c6, %c0_77, %c0_78] : memref<1x8x1x128xbf16, #tpu.memory_space<vmem>>, vector<1x1x1x128xbf16>
      %179 = vector.shape_cast %178 : vector<1x1x1x128xbf16> to vector<1x128xbf16>
      %180 = arith.extf %179 : vector<1x128xbf16> to vector<1x128xf32>
      %c0_79 = arith.constant 0 : index
      %c6_80 = arith.constant 6 : index
      %c0_81 = arith.constant 0 : index
      %c0_82 = arith.constant 0 : index
      %181 = vector.load %arg4[%c0_79, %c6_80, %c0_81, %c0_82] : memref<1x8x1x128xf32, #tpu.memory_space<vmem>>, vector<1x1x1x128xf32>
      %182 = vector.shape_cast %181 : vector<1x1x1x128xf32> to vector<1x128xf32>
      %cst_83 = arith.constant 0.000000e+00 : f32
      %183 = vector.broadcast %cst_83 : f32 to vector<1x128xf32>
      %184 = arith.maximumf %180, %183 : vector<1x128xf32>
      %185 = math.absf %180 : vector<1x128xf32>
      %cst_84 = arith.constant 0.000000e+00 : f32
      %186 = vector.broadcast %cst_84 : f32 to vector<1x128xf32>
      %187 = arith.subf %186, %185 : vector<1x128xf32>
      %188 = math.exp %187 : vector<1x128xf32>
      %cst_85 = arith.constant 1.000000e+00 : f32
      %189 = vector.broadcast %cst_85 : f32 to vector<1x128xf32>
      %190 = arith.addf %189, %188 : vector<1x128xf32>
      %191 = math.log %190 : vector<1x128xf32>
      %192 = arith.addf %184, %191 : vector<1x128xf32>
      %193 = arith.mulf %182, %180 : vector<1x128xf32>
      %194 = arith.subf %192, %193 : vector<1x128xf32>
      %cst_86 = arith.constant 16.1180954 : f32
      %195 = vector.broadcast %cst_86 : f32 to vector<1x128xf32>
      %196 = arith.minimumf %194, %195 : vector<1x128xf32>
      %197 = arith.addf %177, %196 : vector<1x128xf32>
      %c0_87 = arith.constant 0 : index
      %c7 = arith.constant 7 : index
      %c0_88 = arith.constant 0 : index
      %c0_89 = arith.constant 0 : index
      %198 = vector.load %arg3[%c0_87, %c7, %c0_88, %c0_89] : memref<1x8x1x128xbf16, #tpu.memory_space<vmem>>, vector<1x1x1x128xbf16>
      %199 = vector.shape_cast %198 : vector<1x1x1x128xbf16> to vector<1x128xbf16>
      %200 = arith.extf %199 : vector<1x128xbf16> to vector<1x128xf32>
      %c0_90 = arith.constant 0 : index
      %c7_91 = arith.constant 7 : index
      %c0_92 = arith.constant 0 : index
      %c0_93 = arith.constant 0 : index
      %201 = vector.load %arg4[%c0_90, %c7_91, %c0_92, %c0_93] : memref<1x8x1x128xf32, #tpu.memory_space<vmem>>, vector<1x1x1x128xf32>
      %202 = vector.shape_cast %201 : vector<1x1x1x128xf32> to vector<1x128xf32>
      %cst_94 = arith.constant 0.000000e+00 : f32
      %203 = vector.broadcast %cst_94 : f32 to vector<1x128xf32>
      %204 = arith.maximumf %200, %203 : vector<1x128xf32>
      %205 = math.absf %200 : vector<1x128xf32>
      %cst_95 = arith.constant 0.000000e+00 : f32
      %206 = vector.broadcast %cst_95 : f32 to vector<1x128xf32>
      %207 = arith.subf %206, %205 : vector<1x128xf32>
      %208 = math.exp %207 : vector<1x128xf32>
      %cst_96 = arith.constant 1.000000e+00 : f32
      %209 = vector.broadcast %cst_96 : f32 to vector<1x128xf32>
      %210 = arith.addf %209, %208 : vector<1x128xf32>
      %211 = math.log %210 : vector<1x128xf32>
      %212 = arith.addf %204, %211 : vector<1x128xf32>
      %213 = arith.mulf %202, %200 : vector<1x128xf32>
      %214 = arith.subf %212, %213 : vector<1x128xf32>
      %cst_97 = arith.constant 16.1180954 : f32
      %215 = vector.broadcast %cst_97 : f32 to vector<1x128xf32>
      %216 = arith.minimumf %214, %215 : vector<1x128xf32>
      %217 = arith.addf %197, %216 : vector<1x128xf32>
      %cst_98 = arith.constant 0.000000e+00 : f32
      %218 = vector.broadcast %cst_98 : f32 to vector<1x128xf32>
      %219 = arith.maximumf %158, %218 : vector<1x128xf32>
      %cst_99 = arith.constant 0.000000e+00 : f32
      %220 = vector.broadcast %cst_99 : f32 to vector<1x128xf32>
      %221 = arith.select %21, %219, %220 : vector<1x128xi1>, vector<1x128xf32>
      %cst_100 = arith.constant -16.1180954 : f32
      %cst_101 = arith.constant 16.1180954 : f32
      %222 = vector.broadcast %cst_100 : f32 to vector<1x128xf32>
      %223 = arith.maximumf %222, %17 : vector<1x128xf32>
      %224 = vector.broadcast %cst_101 : f32 to vector<1x128xf32>
      %225 = arith.minimumf %224, %223 : vector<1x128xf32>
      %cst_102 = arith.constant 0.000000e+00 : f32
      %226 = vector.broadcast %cst_102 : f32 to vector<1x128xf32>
      %227 = arith.maximumf %225, %226 : vector<1x128xf32>
      %228 = math.absf %225 : vector<1x128xf32>
      %cst_103 = arith.constant 0.000000e+00 : f32
      %229 = vector.broadcast %cst_103 : f32 to vector<1x128xf32>
      %230 = arith.subf %229, %228 : vector<1x128xf32>
      %231 = math.exp %230 : vector<1x128xf32>
      %cst_104 = arith.constant 1.000000e+00 : f32
      %232 = vector.broadcast %cst_104 : f32 to vector<1x128xf32>
      %233 = arith.addf %232, %231 : vector<1x128xf32>
      %234 = math.log %233 : vector<1x128xf32>
      %235 = arith.addf %227, %234 : vector<1x128xf32>
      %236 = arith.mulf %221, %225 : vector<1x128xf32>
      %237 = arith.subf %235, %236 : vector<1x128xf32>
      %238 = arith.mulf %237, %14 : vector<1x128xf32>
      %c0_105 = arith.constant 0 : index
      %c0_106 = arith.constant 0 : index
      %239 = vector.load %arg6[%c0_105, %c0_106] : memref<1x128xf32, #tpu.memory_space<vmem>>, vector<1x128xf32>
      %240 = arith.addf %239, %23 : vector<1x128xf32>
      %c0_107 = arith.constant 0 : index
      %c0_108 = arith.constant 0 : index
      %241 = vector.load %arg6[%c0_107, %c0_108] : memref<1x128xf32, #tpu.memory_space<vmem>>, vector<1x128xf32>
      tpu.vector_store %arg6[%c0_107, %c0_108], %240 {strides = array<i32>} : memref<1x128xf32, #tpu.memory_space<vmem>>, vector<1x128xf32>,
      %c0_109 = arith.constant 0 : index
      %c0_110 = arith.constant 0 : index
      %242 = vector.load %arg7[%c0_109, %c0_110] : memref<1x128xf32, #tpu.memory_space<vmem>>, vector<1x128xf32>
      %cst_111 = arith.constant 1.000000e+00 : f32
      %243 = vector.broadcast %cst_111 : f32 to vector<1x128xf32>
      %244 = arith.subf %243, %158 : vector<1x128xf32>
      %245 = arith.mulf %244, %23 : vector<1x128xf32>
      %246 = arith.addf %242, %245 : vector<1x128xf32>
      %c0_112 = arith.constant 0 : index
      %c0_113 = arith.constant 0 : index
      %247 = vector.load %arg7[%c0_112, %c0_113] : memref<1x128xf32, #tpu.memory_space<vmem>>, vector<1x128xf32>
      tpu.vector_store %arg7[%c0_112, %c0_113], %246 {strides = array<i32>} : memref<1x128xf32, #tpu.memory_space<vmem>>, vector<1x128xf32>,
      %c0_114 = arith.constant 0 : index
      %c0_115 = arith.constant 0 : index
      %248 = vector.load %arg8[%c0_114, %c0_115] : memref<1x128xf32, #tpu.memory_space<vmem>>, vector<1x128xf32>
      %249 = arith.mulf %217, %23 : vector<1x128xf32>
      %250 = arith.addf %248, %249 : vector<1x128xf32>
      %c0_116 = arith.constant 0 : index
      %c0_117 = arith.constant 0 : index
      %251 = vector.load %arg8[%c0_116, %c0_117] : memref<1x128xf32, #tpu.memory_space<vmem>>, vector<1x128xf32>
      tpu.vector_store %arg8[%c0_116, %c0_117], %250 {strides = array<i32>} : memref<1x128xf32, #tpu.memory_space<vmem>>, vector<1x128xf32>,
      %c0_118 = arith.constant 0 : index
      %c0_119 = arith.constant 0 : index
      %252 = vector.load %arg9[%c0_118, %c0_119] : memref<1x128xf32, #tpu.memory_space<vmem>>, vector<1x128xf32>
      %253 = arith.addf %252, %238 : vector<1x128xf32>
      %c0_120 = arith.constant 0 : index
      %c0_121 = arith.constant 0 : index
      %254 = vector.load %arg9[%c0_120, %c0_121] : memref<1x128xf32, #tpu.memory_space<vmem>>, vector<1x128xf32>
      tpu.vector_store %arg9[%c0_120, %c0_121], %253 {strides = array<i32>} : memref<1x128xf32, #tpu.memory_space<vmem>>, vector<1x128xf32>,
    } else {
    }
    %true = arith.constant true
    %31 = arith.xori %28, %true : i1
    %32 = arith.extui %31 : i1 to i32
    %c0_i32_11 = arith.constant 0 : i32
    %33 = arith.cmpi ne, %32, %c0_i32_11 : i32
    scf.if %33 {
      %cst_14 = arith.constant -16.1180954 : f32
      %cst_15 = arith.constant 16.1180954 : f32
      %37 = vector.broadcast %cst_14 : f32 to vector<1x128xf32>
      %38 = arith.maximumf %37, %17 : vector<1x128xf32>
      %39 = vector.broadcast %cst_15 : f32 to vector<1x128xf32>
      %40 = arith.minimumf %39, %38 : vector<1x128xf32>
      %cst_16 = arith.constant 0.000000e+00 : f32
      %41 = vector.broadcast %cst_16 : f32 to vector<1x128xf32>
      %42 = arith.maximumf %40, %41 : vector<1x128xf32>
      %43 = math.absf %40 : vector<1x128xf32>
      %cst_17 = arith.constant 0.000000e+00 : f32
      %44 = vector.broadcast %cst_17 : f32 to vector<1x128xf32>
      %45 = arith.subf %44, %43 : vector<1x128xf32>
      %46 = math.exp %45 : vector<1x128xf32>
      %cst_18 = arith.constant 1.000000e+00 : f32
      %47 = vector.broadcast %cst_18 : f32 to vector<1x128xf32>
      %48 = arith.addf %47, %46 : vector<1x128xf32>
      %49 = math.log %48 : vector<1x128xf32>
      %50 = arith.addf %42, %49 : vector<1x128xf32>
      %51 = arith.mulf %50, %14 : vector<1x128xf32>
      %c0_19 = arith.constant 0 : index
      %c0_20 = arith.constant 0 : index
      %52 = vector.load %arg9[%c0_19, %c0_20] : memref<1x128xf32, #tpu.memory_space<vmem>>, vector<1x128xf32>
      %53 = arith.addf %52, %51 : vector<1x128xf32>
      %c0_21 = arith.constant 0 : index
      %c0_22 = arith.constant 0 : index
      %54 = vector.load %arg9[%c0_21, %c0_22] : memref<1x128xf32, #tpu.memory_space<vmem>>, vector<1x128xf32>
      tpu.vector_store %arg9[%c0_21, %c0_22], %53 {strides = array<i32>} : memref<1x128xf32, #tpu.memory_space<vmem>>, vector<1x128xf32>,
    } else {
    }
    %c0_i32_12 = arith.constant 0 : i32
    %34 = arith.cmpi eq, %arg1, %c0_i32_12 : i32
    %35 = arith.extui %34 : i1 to i32
    %c0_i32_13 = arith.constant 0 : i32
    %36 = arith.cmpi ne, %35, %c0_i32_13 : i32
    scf.if %36 {
      %37 = tpu.iota {dimensions = array<i32: 1>} : vector<1x8x128xi32>
      %c0_i32_14 = arith.constant 0 : i32
      %38 = vector.broadcast %c0_i32_14 : i32 to vector<1x8x128xi32>
      %39 = arith.cmpi eq, %37, %38 : vector<1x8x128xi32>
      %c0_15 = arith.constant 0 : index
      %c0_16 = arith.constant 0 : index
      %40 = vector.load %arg6[%c0_15, %c0_16] : memref<1x128xf32, #tpu.memory_space<vmem>>, vector<1x128xf32>
      %41 = vector.shape_cast %40 : vector<1x128xf32> to vector<1x1x128xf32>
      %cst_17 = arith.constant dense<0.000000e+00> : vector<1xf32>
      %42 = vector.multi_reduction <add>, %41, %cst_17 [1, 2] : vector<1x1x128xf32> to vector<1xf32>
      %43 = vector.shape_cast %42 : vector<1xf32> to vector<1x1x1xf32>
      %44 = vector.extract %43[0, 0, 0] : f32 from vector<1x1x1xf32>
      %cst_18 = arith.constant 0.000000e+00 : f32
      %45 = vector.broadcast %44 : f32 to vector<1x8x128xf32>
      %46 = vector.broadcast %cst_18 : f32 to vector<1x8x128xf32>
      %47 = arith.select %39, %45, %46 : vector<1x8x128xi1>, vector<1x8x128xf32>
      %c1_i32 = arith.constant 1 : i32
      %48 = vector.broadcast %c1_i32 : i32 to vector<1x8x128xi32>
      %49 = arith.cmpi eq, %37, %48 : vector<1x8x128xi32>
      %c0_19 = arith.constant 0 : index
      %c0_20 = arith.constant 0 : index
      %50 = vector.load %arg7[%c0_19, %c0_20] : memref<1x128xf32, #tpu.memory_space<vmem>>, vector<1x128xf32>
      %51 = vector.shape_cast %50 : vector<1x128xf32> to vector<1x1x128xf32>
      %cst_21 = arith.constant dense<0.000000e+00> : vector<1xf32>
      %52 = vector.multi_reduction <add>, %51, %cst_21 [1, 2] : vector<1x1x128xf32> to vector<1xf32>
      %53 = vector.shape_cast %52 : vector<1xf32> to vector<1x1x1xf32>
      %54 = vector.extract %53[0, 0, 0] : f32 from vector<1x1x1xf32>
      %cst_22 = arith.constant 0.000000e+00 : f32
      %55 = vector.broadcast %54 : f32 to vector<1x8x128xf32>
      %56 = vector.broadcast %cst_22 : f32 to vector<1x8x128xf32>
      %57 = arith.select %49, %55, %56 : vector<1x8x128xi1>, vector<1x8x128xf32>
      %58 = arith.addf %47, %57 : vector<1x8x128xf32>
      %c2_i32 = arith.constant 2 : i32
      %59 = vector.broadcast %c2_i32 : i32 to vector<1x8x128xi32>
      %60 = arith.cmpi eq, %37, %59 : vector<1x8x128xi32>
      %c0_23 = arith.constant 0 : index
      %c0_24 = arith.constant 0 : index
      %61 = vector.load %arg8[%c0_23, %c0_24] : memref<1x128xf32, #tpu.memory_space<vmem>>, vector<1x128xf32>
      %62 = vector.shape_cast %61 : vector<1x128xf32> to vector<1x1x128xf32>
      %cst_25 = arith.constant dense<0.000000e+00> : vector<1xf32>
      %63 = vector.multi_reduction <add>, %62, %cst_25 [1, 2] : vector<1x1x128xf32> to vector<1xf32>
      %64 = vector.shape_cast %63 : vector<1xf32> to vector<1x1x1xf32>
      %65 = vector.extract %64[0, 0, 0] : f32 from vector<1x1x1xf32>
      %cst_26 = arith.constant 0.000000e+00 : f32
      %66 = vector.broadcast %65 : f32 to vector<1x8x128xf32>
      %67 = vector.broadcast %cst_26 : f32 to vector<1x8x128xf32>
      %68 = arith.select %60, %66, %67 : vector<1x8x128xi1>, vector<1x8x128xf32>
      %69 = arith.addf %58, %68 : vector<1x8x128xf32>
      %c3_i32 = arith.constant 3 : i32
      %70 = vector.broadcast %c3_i32 : i32 to vector<1x8x128xi32>
      %71 = arith.cmpi eq, %37, %70 : vector<1x8x128xi32>
      %c0_27 = arith.constant 0 : index
      %c0_28 = arith.constant 0 : index
      %72 = vector.load %arg9[%c0_27, %c0_28] : memref<1x128xf32, #tpu.memory_space<vmem>>, vector<1x128xf32>
      %73 = vector.shape_cast %72 : vector<1x128xf32> to vector<1x1x128xf32>
      %cst_29 = arith.constant dense<0.000000e+00> : vector<1xf32>
      %74 = vector.multi_reduction <add>, %73, %cst_29 [1, 2] : vector<1x1x128xf32> to vector<1xf32>
      %75 = vector.shape_cast %74 : vector<1xf32> to vector<1x1x1xf32>
      %76 = vector.extract %75[0, 0, 0] : f32 from vector<1x1x1xf32>
      %cst_30 = arith.constant 0.000000e+00 : f32
      %77 = vector.broadcast %76 : f32 to vector<1x8x128xf32>
      %78 = vector.broadcast %cst_30 : f32 to vector<1x8x128xf32>
      %79 = arith.select %71, %77, %78 : vector<1x8x128xi1>, vector<1x8x128xf32>
      %80 = arith.addf %69, %79 : vector<1x8x128xf32>
      %c0_31 = arith.constant 0 : index
      %c0_32 = arith.constant 0 : index
      %c0_33 = arith.constant 0 : index
      %81 = vector.load %arg5[%c0_31, %c0_32, %c0_33] : memref<1x8x128xf32, #tpu.memory_space<vmem>>, vector<1x8x128xf32>
      tpu.vector_store %arg5[%c0_31, %c0_32, %c0_33], %80 {strides = array<i32>} : memref<1x8x128xf32, #tpu.memory_space<vmem>>, vector<1x8x128xf32>,
    } else {
    }
    return
  }
  func.func @transform_0(%arg0: i32, %arg1: i32, %arg2: memref<3xf32, #tpu.memory_space<smem>>) -> (i32, i32, i32, i32) {
    %c0_i32 = arith.constant 0 : i32
    %c0_i32_0 = arith.constant 0 : i32
    %c0_i32_1 = arith.constant 0 : i32
    return %arg0, %c0_i32, %arg1, %c0_i32_0 : i32, i32, i32, i32
  }
  func.func @transform_1(%arg0: i32, %arg1: i32, %arg2: memref<3xf32, #tpu.memory_space<smem>>) -> (i32, i32, i32, i32) {
    %c0_i32 = arith.constant 0 : i32
    %c0_i32_0 = arith.constant 0 : i32
    %c0_i32_1 = arith.constant 0 : i32
    return %arg0, %c0_i32, %arg1, %c0_i32_0 : i32, i32, i32, i32
  }
  func.func @transform_2(%arg0: i32, %arg1: i32, %arg2: memref<3xf32, #tpu.memory_space<smem>>) -> (i32, i32, i32) {
    %c0_i32 = arith.constant 0 : i32
    %c0_i32_0 = arith.constant 0 : i32
    %c0_i32_1 = arith.constant 0 : i32
    return %arg0, %c0_i32, %c0_i32_0 : i32, i32, i32
  }
}

</mosaic_0001>

<bundles_post_ra>
// kernel: tpu_custom_call.1
= control target key start
LH: loop header
LB: loop body
LE: loop exit
PB: predicated region body
PF: predicated region fallthrough
CT: control target
= control target key end

     0   :  { %s889_s15 = smov [#allocation7]   ;;  %s1172_s0 = inlined_call_operand.vmem [shape: f32[3], index: 0, kind: input, shape index: {}]   ;;  %s1173_s1 = inlined_call_operand.vmem [shape: bf16[6,8,1,128], index: 1, kind: input, shape index: {}]   ;;  %s1174_s2 = inlined_call_operand.vmem [shape: f32[6,8,1,128], index: 2, kind: input, shape index: {}]   ;;  %s1175_s3 = inlined_call_operand.hbm [shape: f32[6,8,128], index: 3, kind: output, shape index: {}]  }
   0x1   :  { %s9_s14 = sshll.u32 %s1172_s0, 4  ;;  %s10_s14 = int_to_ptr.vmem [resolvable:$true] %s9_s14 }
   0x2   :  { %12 = dma.vmem_to_smem %s10_s14, 16, %s889_s15, [#allocation6] }
   0x3   :  { %859 = dma.done.wait [#allocation6], 16 }
   0x4   :  { %860 = vsyncadd [#allocation6], 4294967280 }
   0x5   :  { %15 = sfence }
   0x6   :  { %16 = vsyncpa [#allocation9], 0 }
   0x7   :  { %18 = vsyncpa [#allocation9 + $0x1], 0  ;;  %s914_s16 = smov 0   ;;  %s916_s17 = smov 0  }
   0x8   :  { %s918_s18 = smov 0   ;;  %s920_s19 = smov 0  }
   0x9   :  { %s922_s20 = smov 0   ;;  %s924_s21 = smov 0  }
   0xa LB: > { %s651_s0 = sadd.s32 4294967295, %s887_s21   ;;  %s652_s22 = sadd.s32 4294967294, %s887_s21   ;;  %s887_s21 = sphi %s924_s21, %s24_s21   ;;  %s883_s20 = sphi %s922_s20, %s1190_s20   ;;  %s879_s19 = sphi %s920_s19, %s1189_s19   ;;  %s875_s18 = sphi %s918_s18, %s1188_s18   ;;  %s871_s17 = sphi %s916_s17, %s1187_s17   ;;  %s867_s16 = sphi %s914_s16, %s1186_s16  }
   0xb   : > { %s36_s23 = sadd.s32 1, %s883_s20  ;;  %s99_s24 = sadd.s32 1, %s875_s18 }
   0xc   : > { %p38_p0 = scmp.ge.s32.totalorder %s36_s23, 6  ;;  %p109_p1 = scmp.ne.s32.totalorder %s875_s18, %s871_s17 }
   0xd   : > { %p110_p2 = scmp.eq.s32.totalorder %s651_s0, 5  ;;  %p115_p3 = scmp.ne.s32.totalorder %s871_s17, %s867_s16 }
   0xe   : > { %s1192_s23 = smov (%p38_p0, %s36_s23), 0  ;;  %p116_p5 = scmp.eq.s32.totalorder %s652_s22, 5 }
   0xf   : > { %p954_p4 = por %p110_p2, %p109_p1  ;;  %s96_s26 = ssub.s32 %s883_s20, %s1192_s23 }
  0x10   : > { %p655_p6 = scmp.ge.s32.totalorder %s887_s21, 1  ;;  %p97_p7 = scmp.eq.s32.totalorder %s96_s26, 0 }
  0x11   : > { %p961_p8 = por %p116_p5, %p115_p3  ;;  %p154_p9 = scmp.lt.s32.totalorder %s887_s21, 7 }
  0x12   : > { %s967_s28 = scalar_select %p97_p7, %s875_s18, %s99_s24  }
  0x13   : > { %p155_p10 = pnand %p655_p6, %p154_p9 }
  0x14   : > { %s182_s29 = sand.u32 (!%p155_p10), 1, %s871_s17   ;;  %p185_p11 = scmp.lt.s32.totalorder (!%p155_p10), %s879_s19, 5 }
  0x15   : > { %158 = sbr.rel (%p155_p10) target bundleno = 530 (0x212), region = 28  ;;  %s973_s30 = sshll.u32 (!%p155_p10), %s182_s29, 3 }
  0x16   : > { %s184_s13 = scalar_lea.vmem (!%p155_p10), [#allocation8], %s973_s30 }
  0x1a   : > { %v207_v0 = vlaneseq  ;;  %v890_v1 = vmov 0.0   ;;  %s186_s4 = scalar_select %p185_p11, %s879_s19, 5  ;;  %vm227_vm0 = vcmask 1040384  }
  0x1b   : > { %203 = vst [vmem:[#allocation2] sm:$0x1] %v890_v1 }
  0x1c   : > { %204 = vst [vmem:[#allocation3] sm:$0x1] %v890_v1  ;;  %v975_v2 = vshrl.u32 %v207_v0, 7  ;;  %v210_v3 = vand.u32 127, %v207_v0  ;;  %s657_s5 = sshll.u32 %s186_s4, 3 }
  0x1d   : > { %205 = vst [vmem:[#allocation4] sm:$0x1] %v890_v1  ;;  %s982_s8 = scalar_lea.vmem %s1173_s1, %s657_s5  ;;  %s987_s11 = scalar_lea.vmem %s1174_s2, %s657_s5 }
  0x1e   : > { %206 = vst [vmem:[#allocation5] sm:$0x1] %v890_v1  ;;  %v212_v4 = vmul.u32 128, %v975_v2  ;;  %v992_v6 = vld [vmem:[%s982_s8 + $0x4] sm:$0x1] }
  0x1f   : > { %v995_v7 = vld [vmem:[%s987_s11 + $0x4] sm:$0x1]  ;;  %v221_v8 = vunpack.c.l.bf16 %v992_v6 }
  0x20   : > { %v989_v5 = vadd.s32 %v212_v4, %v210_v3  ;;  %vm224_vm2 = vcmp.gt.f32.partialorder %v995_v7, 0.5 }
  0x21   : > { %v1004_v10 = vsel %vm224_vm2, 1.0, %v890_v1 }
  0x22   : > { %vm216_vm1 = vcmp.lt.s32.totalorder %v989_v5, 64  ;;  %v228_v11 = vsel %vm227_vm0, %v1004_v10, 0.0 }
  0x23   : > { %v1000_v9 = vsel %vm216_vm1, 1.0, %v890_v1  ;;  %229 = vadd.xlane.f32.xlu0 %v228_v11 }
  0x96   : > { %v230_v12 = vpop.xlane.xlu0 %229 }
  0x97   : > { %v231_v13 = vrot.slane %v230_v12, 4 }
  0x99   : > { %v232_v14 = vadd.f32 %v231_v13, %v230_v12 }
  0x9b   : > { %v233_v15 = vrot.slane %v232_v14, 2 }
  0x9d   : > { %v234_v16 = vadd.f32 %v233_v15, %v232_v14 }
  0x9f   : > { %v235_v17 = vrot.slane %v234_v16, 1 }
  0xa1   : > { %v236_v18 = vadd.f32 %v235_v17, %v234_v16 }
  0xa3   : > { %688 = vpush %v236_v18 }
  0xd4   : > { %s1008_s12 = spop %688 }
  0xd5   : > { %p238_p12 = scmp.gt.f32.partialorder %s1008_s12, 0.0 }
  0xd6   : > { %v454_v19 = vld [vmem:[#allocation2] sm:$0x1] (%p238_p12)  ;;  %v664_v21 = vld [vmem:[%s982_s8 + $0x1] sm:$0x1] (%p238_p12)  ;;  %v666_v25 = vld [vmem:[%s982_s8 + $0x3] sm:$0x1] (%p238_p12)  ;;  %v314_v30 = vcvt.s32.f32 (%p238_p12), %v989_v5 }
  0xd7   : > { %241 = sbr.rel (!%p238_p12) target bundleno = 293 (0x125), region = 36  ;;  %v242_v20 = vld [vmem:[%s982_s8] sm:$0x1] (%p238_p12)  ;;  %v455_v22 = vadd.f32 (%p238_p12), %v1004_v10, %v454_v19  ;;  %v265_v24 = vunpack.c.l.bf16 (%p238_p12), %v664_v21  ;;  %s321_s14 = ssub.s32 (%p238_p12), 0, %s879_s19  ;;  %v287_v26 = vunpack.c.l.bf16 (%p238_p12), %v666_v25  ;;  %v676_v31 = vld [vmem:[%s982_s8 + $0x5] sm:$0x1] (%p238_p12) }
  0xd8   : > { %v243_v23 = vunpack.c.l.bf16 (%p238_p12), %v242_v20  ;;  %s671_s15 = smin.u32 (%p238_p12), %s879_s19, %s321_s14  ;;  %v678_v32 = vld [vmem:[%s982_s8 + $0x6] sm:$0x1] (%p238_p12)  ;;  %v1023_v33 = vunpack.c.l.bf16 (%p238_p12), %v676_v31  ;;  %v680_v35 = vld [vmem:[%s982_s8 + $0x7] sm:$0x1] (%p238_p12)  ;;  %v315_v36 = vadd.f32 (%p238_p12), 0.5, %v314_v30  ;;  %p320_p13 = scmp.lt.s32.totalorder (%p238_p12), %s879_s19, 0 }
  0xd9   : > { %456 = vst [vmem:[#allocation2] sm:$0x1] (%p238_p12), %v455_v22  ;;  %v665_v28 = vmul.f32 (%p238_p12), -1.442695, %v265_v24  ;;  %v667_v29 = vmul.f32 (%p238_p12), -1.442695, %v287_v26  ;;  %v1025_v34 = vunpack.c.l.bf16 (%p238_p12), %v678_v32  ;;  %v1032_v39 = vunpack.c.l.bf16 (%p238_p12), %v680_v35 }
  0xda   : > { %v663_v27 = vmul.f32 (%p238_p12), -1.442695, %v243_v23  ;;  %756 = sdivrem.u32 (%p238_p12), %s671_s15, 3  ;;  %v391_v37 = vand.u32 (%p238_p12), 2147483647, %v1023_v33  ;;  %v1035_v48 = vmul.f32 (%p238_p12), 0.125, %v315_v36 }
  0xdb   : > { %v408_v38 = vand.u32 (%p238_p12), 2147483647, %v1025_v34  ;;  %v426_v47 = vand.u32 (%p238_p12), 2147483647, %v1032_v39  ;;  %v1056_v16 = vclamps-f32 (%p238_p12), %v221_v8, 16.118095 }
  0xdc   : > { %759 = vpow2.f32 %v663_v27  ;;  %v392_v43 = vsub.f32 0.0, %v391_v37  ;;  %v317_v53 = vfloor.f32 %v1035_v48 }
  0xdd   : > { %761 = vpow2.f32 %v665_v28  ;;  %v409_v46 = vsub.f32 0.0, %v408_v38  ;;  %v427_v52 = vsub.f32 0.0, %v426_v47  ;;  %v443_v35 = vand.u32 2147483647, %v1056_v16 }
  0xde   : > { %763 = vpow2.f32 %v667_v29  ;;  %v393_v50 = vmul.f32 1.442695, %v392_v43  ;;  %v318_v62 = vmul.f32 8.0, %v317_v53 }
  0xdf   : > { %v410_v51 = vmul.f32 1.442695, %v409_v46  ;;  %v428_v55 = vmul.f32 1.442695, %v427_v52  ;;  %v679_v52 = vld [vmem:[%s987_s11 + $0x6] sm:$0x1] }
  0xe2   : > { %v760_v40 = vpop.eup %759 }
  0xe3   : > { %v762_v41 = vpop.eup %761  ;;  %v247_v42 = vadd.f32 1.0, %v760_v40  ;;  %s757_s0 = spop.drf %756 }
  0xe4   : > { %v764_v44 = vpop.eup %763  ;;  %v269_v45 = vadd.f32 1.0, %v762_v41  ;;  %s758_s22 = spop.drf %756 }
  0xe5   : > { %765 = vrcp.f32 %v247_v42  ;;  %v1038_v49 = vadd.f32 1.0, %v764_v44  ;;  %s325_s24 = ssub.s32 0, %s758_s22  ;;  %v257_v54 = vand.u32 2147483647, %v247_v42  ;;  %v259_v57 = vand.u32 2147483648, %v247_v42 }
  0xe6   : > { %767 = vrcp.f32 %v269_v45  ;;  %s1194_s24 = smov (!%p320_p13, %s325_s24), %s758_s22  ;;  %v281_v58 = vand.u32 2147483648, %v269_v45  ;;  %vm253_vm3 = vweird.f32 %v247_v42  ;;  %vm275_vm4 = vweird.f32 %v269_v45  ;;  %v669_v44 = vld [vmem:[%s987_s11 + $0x2] sm:$0x1] }
  0xe7   : > { %769 = vrcp.f32 %v1038_v49  ;;  %p673_p0 = scmp.lt.s32.totalorder %s1194_s24, 0  ;;  %vm1047_vm6 = vcmp.eq.f32.partialorder %v257_v54, 8.507059e+37  ;;  %v279_v1 = vand.u32 2147483647, %v269_v45  ;;  %s331_s26 = sadd.s32 3, %s1194_s24  ;;  %v260_v4 = vor.u32 1.1754944e-38, %v259_v57 }
  0xe8   : > { %771 = vpow2.f32 %v393_v50  ;;  %v282_v12 = vor.u32 1.1754944e-38, %v281_v58  ;;  %vm297_vm8 = vweird.f32 %v1038_v49  ;;  %v301_v20 = vand.u32 2147483647, %v1038_v49  ;;  %v677_v50 = vld [vmem:[%s987_s11 + $0x5] sm:$0x1] }
  0xe9   : > { %773 = vpow2.f32 %v410_v51  ;;  %v303_v21 = vand.u32 2147483648, %v1038_v49  ;;  %s1196_s26 = smov (!%p673_p0, %s331_s26), %s1194_s24  ;;  %vm280_vm12 = vcmp.eq.f32.partialorder %v279_v1, 8.507059e+37  ;;  %v390_v51 = vmax.f32 %v1023_v33, 0.0 }
  0xea   : > { %775 = vpow2.f32 %v428_v55  ;;  %s1088_s4 = sld [smem:[#allocation7 + %s1196_s26]]  ;;  %vm302_vm14 = vcmp.eq.f32.partialorder %v301_v20, 8.507059e+37  ;;  %v444_v54 = vsub.f32 0.0, %v443_v35  ;;  %v399_v5 = vmul.f32 %v677_v50, %v1023_v33 }
  0xeb   : > { %v766_v56 = vpop.eup %765  ;;  %v304_v40 = vor.u32 1.1754944e-38, %v303_v21  ;;  %v349_v1 = vmul.f32 0.5, %v669_v44 }
  0xec   : > { %v768_v59 = vpop.eup %767  ;;  %v249_v60 = vmul.f32 %v766_v56, %v247_v42  ;;  %vm254_vm5 = vweird.f32 %v766_v56  ;;  %v445_v33 = vmul.f32 1.442695, %v444_v54 }
  0xed   : > { %v271_v61 = vmul.f32 %v768_v59, %v269_v45  ;;  %v770_v3 = vpop.eup %769  ;;  %vm276_vm7 = vweird.f32 %v768_v59  ;;  %vm1060_vm9 = vmor %vm253_vm3, %vm254_vm5  ;;  %v670_v45 = vld [vmem:[%s987_s11 + $0x3] sm:$0x1] }
  0xee   : > { %v250_v63 = vsub.f32 1.0, %v249_v60  ;;  %v772_v13 = vpop.eup %771  ;;  %v293_v15 = vmul.f32 %v770_v3, %v1038_v49  ;;  %vm1071_vm10 = vmor %vm275_vm4, %vm276_vm7  ;;  %vm298_vm11 = vweird.f32 %v770_v3  ;;  %v319_v49 = vsub.f32 %v314_v30, %v318_v62  ;;  %v681_v30 = vld [vmem:[%s987_s11 + $0x7] sm:$0x1] }
  0xef   : > { %v272_v11 = vsub.f32 1.0, %v271_v61  ;;  %v774_v17 = vpop.eup %773  ;;  %v395_v22 = vadd.f32 1.0, %v772_v13  ;;  %vm1084_vm13 = vmor %vm297_vm8, %vm298_vm11  ;;  %v425_v62 = vmax.f32 %v1032_v39, 0.0  ;;  %v668_v13 = vld [vmem:[%s987_s11 + $0x1] sm:$0x1]  ;;  %v434_v18 = vmul.f32 %v681_v30, %v1032_v39 }
  0xf0   : > { %v251_v14 = vmul.f32 %v766_v56, %v250_v63  ;;  %v776_v23 = vpop.eup %775  ;;  %v294_v26 = vsub.f32 1.0, %v293_v15  ;;  %v412_v27 = vadd.f32 1.0, %v774_v17  ;;  %v342_v20 = vstv %s1088_s4 }
  0xf1   : > { %v273_v19 = vmul.f32 %v768_v59, %v272_v11  ;;  %777 = vlog2.f32 %v395_v22  ;;  %v430_v29 = vadd.f32 1.0, %v776_v23  ;;  %v416_v11 = vmul.f32 %v679_v52, %v1025_v34 }
  0xf2   : > { %v252_v24 = vadd.f32 %v766_v56, %v251_v14  ;;  %v295_v32 = vmul.f32 %v770_v3, %v294_v26  ;;  %779 = vlog2.f32 %v412_v27 }
  0xf3   : > { %v274_v28 = vadd.f32 %v768_v59, %v273_v19  ;;  %781 = vlog2.f32 %v430_v29 }
  0xf4   : > { %v256_v31 = vsel %vm1060_vm9, %v766_v56, %v252_v24  ;;  %v296_v42 = vadd.f32 %v770_v3, %v295_v32  ;;  %783 = vpow2.f32 %v445_v33 }
  0xf5   : > { %v261_v36 = vsel %vm1047_vm6, %v260_v4, %v256_v31  ;;  %v278_v37 = vsel %vm1071_vm10, %v768_v59, %v274_v28  ;;  %v407_v59 = vmax.f32 %v1025_v34, 0.0 }
  0xf6   : > { %v283_v41 = vsel %vm280_vm12, %v282_v12, %v278_v37  ;;  %v334_v43 = vmul.f32 2.0, %v261_v36  ;;  %v300_v47 = vsel %vm1084_vm13, %v770_v3, %v296_v42  ;;  %v352_v3 = vmul.f32 0.5, %v670_v45  ;;  %v307_v12 = vld [vmem:[%s987_s11] sm:$0x1] }
  0xf7   : > { %v337_v46 = vmul.f32 2.0, %v283_v41  ;;  %v778_v55 = vpop.eup %777  ;;  %v305_v56 = vsel %vm302_vm14, %v304_v40, %v300_v47  ;;  %v350_v26 = vsub.f32 %v307_v12, %v349_v1  ;;  %v351_v27 = vadd.f32 %v349_v1, %v307_v12 }
  0xf8   : > { %v674_v57 = vadd.f32 -0.5, %v334_v43  ;;  %v780_v60 = vpop.eup %779  ;;  %v340_v61 = vmul.f32 2.0, %v305_v56  ;;  %v397_v63 = vmul.f32 0.6931472, %v778_v55  ;;  %v353_v34 = vsub.f32 %v668_v13, %v352_v3 }
  0xf9   : > { %v675_v58 = vadd.f32 -0.5, %v337_v46  ;;  %v782_v0 = vpop.eup %781  ;;  %v414_v4 = vmul.f32 0.6931472, %v780_v60  ;;  %v354_v31 = vadd.f32 %v668_v13, %v352_v3  ;;  %v365_v41 = vmul.f32 %v670_v45, %v669_v44 }
  0xfa   : > { %v341_v14 = vmul.f32 %v340_v61, %v340_v61  ;;  %v398_v15 = vadd.f32 %v397_v63, %v390_v51  ;;  %v432_v17 = vmul.f32 0.6931472, %v782_v0  ;;  %v336_v19 = vadd.f32 %v674_v57, %v319_v49  ;;  %v462_v61 = vld [vmem:[#allocation4] sm:$0x1] }
  0xfb   : > { %v415_v21 = vadd.f32 %v414_v4, %v407_v59  ;;  %v339_v22 = vadd.f32 %v675_v58, %v317_v53  ;;  %v784_v58 = vpop.eup %783 }
  0xfc   : > { %v343_v23 = vmul.f32 %v342_v20, %v341_v14  ;;  %v400_v24 = vsub.f32 %v398_v15, %v399_v5  ;;  %v433_v25 = vadd.f32 %v432_v17, %v425_v62  ;;  %v447_v3 = vadd.f32 1.0, %v784_v58 }
  0xfd   : > { %v417_v28 = vsub.f32 %v415_v21, %v416_v11  ;;  %v442_v21 = vmax.f32 %v1056_v16, 0.0 }
  0xfe   : > { %v344_v29 = vmul.f32 0.5, %v343_v23  ;;  %v401_v32 = vmin.f32 %v400_v24, 16.118095  ;;  %v435_v35 = vsub.f32 %v433_v25, %v434_v18  ;;  %v364_v56 = vmul.f32 %v343_v23, %v343_v23  ;;  %v457_v25 = vld [vmem:[#allocation3] sm:$0x1] }
  0xff   : > { %v418_v36 = vmin.f32 %v417_v28, 16.118095  ;;  %785 = vlog2.f32 %v447_v3 }
 0x100   : > { %v345_v39 = vsub.f32 %v336_v19, %v344_v29  ;;  %v346_v37 = vadd.f32 %v344_v29, %v336_v19  ;;  %v347_v38 = vsub.f32 %v339_v22, %v344_v29  ;;  %v348_v40 = vadd.f32 %v344_v29, %v339_v22 }
 0x101   : > { %v419_v48 = vadd.f32 %v418_v36, %v401_v32  ;;  %v436_v53 = vmin.f32 %v435_v35, 16.118095  ;;  %v366_v0 = vadd.f32 %v365_v41, %v364_v56  ;;  %v466_v32 = vld [vmem:[#allocation5] sm:$0x1] }
 0x102   : > { %v355_v42 = vmin.f32 %v346_v37, %v351_v27  ;;  %v356_v43 = vmax.f32 %v345_v39, %v350_v26  ;;  %v359_v46 = vmin.f32 %v348_v40, %v354_v31  ;;  %v360_v47 = vmax.f32 %v347_v38, %v353_v34 }
 0x103   : > { %v368_v49 = vmax.f32 %v346_v37, %v351_v27  ;;  %v369_v50 = vmin.f32 %v345_v39, %v350_v26  ;;  %v372_v51 = vmax.f32 %v348_v40, %v354_v31  ;;  %v373_v52 = vmin.f32 %v347_v38, %v353_v34 }
 0x104   : > { %v357_v54 = vsub.f32 %v355_v42, %v356_v43  ;;  %v361_v55 = vsub.f32 %v359_v46, %v360_v47  ;;  %v437_v57 = vadd.f32 %v436_v53, %v419_v48 }
 0x105   : > { %v370_v59 = vsub.f32 %v368_v49, %v369_v50  ;;  %v374_v60 = vsub.f32 %v372_v51, %v373_v52  ;;  %v786_v14 = vpop.eup %785 }
 0x106   : > { %v358_v63 = vmax.f32 %v357_v54, 0.0  ;;  %v362_v44 = vmax.f32 %v361_v55, 0.0  ;;  %v463_v45 = vmul.f32 %v1004_v10, %v437_v57  ;;  %v449_v33 = vmul.f32 0.6931472, %v786_v14 }
 0x107   : > { %v371_v5 = vmax.f32 %v370_v59, 0.0  ;;  %v375_v30 = vmax.f32 %v374_v60, 0.0 }
 0x108   : > { %v363_v62 = vmul.f32 %v362_v44, %v358_v63  ;;  %v464_v1 = vadd.f32 %v463_v45, %v462_v61  ;;  %v450_v26 = vadd.f32 %v449_v33, %v442_v21 }
 0x109   : > { %v376_v4 = vmul.f32 %v375_v30, %v371_v5 }
 0x10a   : > { %v367_v11 = vsub.f32 %v366_v0, %v363_v62  ;;  %465 = vst [vmem:[#allocation4] sm:$0x1] %v464_v1 }
 0x10b   : > { %v379_v12 = vadd.f32 1e-09, %v376_v4 }
 0x10c   : > { %v377_v13 = vadd.f32 1e-09, %v367_v11  ;;  %v382_v17 = vsub.f32 %v376_v4, %v367_v11 }
 0x10d   : > { %787 = vrcp.f32 %v379_v12 }
 0x10e   : > { %789 = vrcp.f32 %v377_v13 }
 0x113   : > { %v788_v15 = vpop.eup %787 }
 0x114   : > { %v790_v18 = vpop.eup %789  ;;  %v383_v20 = vmul.f32 %v788_v15, %v382_v17 }
 0x115   : > { %v381_v19 = vmul.f32 %v790_v18, %v363_v62 }
 0x117   : > { %v384_v22 = vsub.f32 %v381_v19, %v383_v20 }
 0x119   : > { %v458_v23 = vsub.f32 1.0, %v384_v22  ;;  %v438_v24 = vmax.f32 %v384_v22, 0.0 }
 0x11b   : > { %v459_v27 = vmul.f32 %v1004_v10, %v458_v23  ;;  %v439_v34 = vsel %vm224_vm2, %v438_v24, 0.0 }
 0x11c   : > { %v451_v28 = vmul.f32 %v1056_v16, %v439_v34 }
 0x11d   : > { %v460_v29 = vadd.f32 %v459_v27, %v457_v25 }
 0x11e   : > { %v452_v31 = vsub.f32 %v450_v26, %v451_v28 }
 0x11f   : > { %461 = vst [vmem:[#allocation3] sm:$0x1] %v460_v29 }
 0x120   : > { %v453_v35 = vmul.f32 %v1000_v9, %v452_v31 }
 0x122   : > { %v467_v36 = vadd.f32 %v466_v32, %v453_v35 }
 0x124   : > { %468 = vst [vmem:[#allocation5] sm:$0x1] %v467_v36 }
 0x125 PF: > { %471 = sbr.rel (%p238_p12) target bundleno = 331 (0x14b), region = 40 }
 0x12a   : > { %v683_v10 = vclamps-f32 %v221_v8, 16.118095 }
 0x12b   : > { %v484_v42 = vld [vmem:[#allocation5] sm:$0x1] }
 0x12c   : > { %v475_v39 = vand.u32 2147483647, %v683_v10  ;;  %v474_v40 = vmax.f32 %v683_v10, 0.0 }
 0x12e   : > { %v476_v7 = vsub.f32 0.0, %v475_v39 }
 0x130   : > { %v477_v37 = vmul.f32 1.442695, %v476_v7 }
 0x132   : > { %791 = vpow2.f32 %v477_v37 }
 0x138   : > { %v792_v16 = vpop.eup %791 }
 0x139   : > { %v479_v38 = vadd.f32 1.0, %v792_v16 }
 0x13b   : > { %793 = vlog2.f32 %v479_v38 }
 0x141   : > { %v794_v41 = vpop.eup %793 }
 0x142   : > { %v481_v48 = vmul.f32 0.6931472, %v794_v41 }
 0x144   : > { %v482_v53 = vadd.f32 %v481_v48, %v474_v40 }
 0x146   : > { %v483_v43 = vmul.f32 %v1000_v9, %v482_v53 }
 0x148   : > { %v485_v46 = vadd.f32 %v484_v42, %v483_v43 }
 0x14a   : > { %486 = vst [vmem:[#allocation5] sm:$0x1] %v485_v46 }
 0x14b PF: > { %v520_v47 = vld [vmem:[#allocation4] sm:$0x1]  ;;  %v491_v6 = vld [vmem:[#allocation2] sm:$0x1]  ;;  %v505_v51 = vld [vmem:[#allocation3] sm:$0x1] }
 0x14c   : > { %v521_v8 = vsel %vm227_vm0, %v520_v47, 0.0  ;;  %v492_v49 = vsel %vm227_vm0, %v491_v6, 0.0  ;;  %v506_v54 = vsel %vm227_vm0, %v505_v51, 0.0  ;;  %s685_s6 = sshll.u32 %s879_s19, 3  ;;  %vm490_vm15 = vcmp.eq.s32.totalorder %v975_v2, 0  ;;  %s563_s12 = sshll.u32 %s184_s13, 4  ;;  %s564_s12 = int_to_ptr.vmem [resolvable:$true] %s563_s12 }
 0x14d   : > { %522 = vadd.xlane.f32.xlu1 %v521_v8  ;;  %493 = vadd.xlane.f32.xlu0 %v492_v49  ;;  %vm519_vm1 = vcmp.eq.s32.totalorder %v975_v2, 2  ;;  %s561_s11 = scalar_lea.hbm %s1175_s3, %s685_s6  ;;  %vm534_vm2 = vcmp.eq.s32.totalorder %v975_v2, 3  ;;  %s551_s15 = scalar_lea.sflag [#allocation9], %s182_s29 }
 0x14e   : > { %s565_s14 = sshll.u32 %s561_s11, 4  ;;  %s827_s4 = scalar_lea.hbm %s1175_s3, 48  ;;  %s566_s14 = int_to_ptr.hbm [resolvable:$true] %s565_s14 }
 0x14f   : > { %s821_s0 = sshra.s32 %s566_s14, 4  ;;  %s822_s0 = int_to_ptr.hbm [resolvable:$true] %s821_s0 }
 0x150   : > { %s823_s22 = scalar_lea.hbm %s822_s0, 8  ;;  %p828_p5 = scmp.lt.s32.totalorder %s822_s0, %s1175_s3 }
 0x151   : > { %v535_v50 = vld [vmem:[#allocation5] sm:$0x1]  ;;  %p824_p1 = scmp.ne.s32.totalorder %s822_s0, %s823_s22  ;;  %p829_p6 = scmp.lt.s32.totalorder %s827_s4, %s823_s22 }
 0x152   : > { %v536_v52 = vsel %vm227_vm0, %v535_v50, 0.0  ;;  %vm504_vm0 = vcmp.eq.s32.totalorder %v975_v2, 1 }
 0x153   : > { %p825_p2 = pnand %p824_p1, %p954_p4  ;;  %p830_p7 = por %p829_p6, %p828_p5 }
 0x155   : > { %537 = vadd.xlane.f32.xlu1 %v536_v52  ;;  %507 = vadd.xlane.f32.xlu0 %v506_v54  ;;  %p826_p3 = pneg %p825_p2 }
 0x157   : > { %p831_p9 = pnand %p830_p7, %p826_p3 }
 0x1c0   : > { %v523_v9 = vpop.xlane.xlu1 %522  ;;  %v494_v55 = vpop.xlane.xlu0 %493 }
 0x1c1   : > { %v524_v56 = vrot.slane %v523_v9, 4  ;;  %v495_v57 = vrot.slane %v494_v55, 4 }
 0x1c3   : > { %v496_v58 = vadd.f32 %v495_v57, %v494_v55  ;;  %v525_v59 = vadd.f32 %v524_v56, %v523_v9 }
 0x1c5   : > { %v497_v60 = vrot.slane %v496_v58, 2  ;;  %v526_v63 = vrot.slane %v525_v59, 2 }
 0x1c7   : > { %v498_v61 = vadd.f32 %v497_v60, %v496_v58  ;;  %v527_v4 = vadd.f32 %v526_v63, %v525_v59 }
 0x1c8   : > { %v538_v44 = vpop.xlane.xlu1 %537  ;;  %v508_v45 = vpop.xlane.xlu0 %507 }
 0x1c9   : > { %v539_v5 = vrot.slane %v538_v44, 4  ;;  %v509_v30 = vrot.slane %v508_v45, 4  ;;  %v499_v62 = vrot.slane %v498_v61, 1  ;;  %v528_v15 = vrot.slane %v527_v4, 1 }
 0x1cb   : > { %v540_v0 = vadd.f32 %v539_v5, %v538_v44  ;;  %v510_v1 = vadd.f32 %v509_v30, %v508_v45  ;;  %v500_v3 = vadd.f32 %v499_v62, %v498_v61  ;;  %v529_v21 = vadd.f32 %v528_v15, %v527_v4 }
 0x1cd   : > { %v541_v11 = vrot.slane %v540_v0, 2  ;;  %v511_v12 = vrot.slane %v510_v1, 2  ;;  %690 = vpush %v500_v3 }
 0x1cf   : > { %v542_v13 = vadd.f32 %v541_v11, %v540_v0  ;;  %v512_v14 = vadd.f32 %v511_v12, %v510_v1 }
 0x1d1   : > { %v513_v17 = vrot.slane %v512_v14, 1  ;;  %v543_v18 = vrot.slane %v542_v13, 1 }
 0x1d3   : > { %v514_v19 = vadd.f32 %v513_v17, %v512_v14  ;;  %v544_v20 = vadd.f32 %v543_v18, %v542_v13 }
 0x1d5   : > { %692 = vpush %v514_v19 }
 0x1d6   : > { %694 = vpush %v529_v21 }
 0x1d7   : > { %696 = vpush %v544_v20 }
 0x1fe   : > { %s691_s5 = spop %690 }
 0x1ff   : > { %v502_v33 = vstv %s691_s5 }
 0x200   : > { %v503_v23 = vsel %vm490_vm15, %v502_v33, 0.0 }
 0x206   : > { %s693_s7 = spop %692 }
 0x207   : > { %v516_v22 = vstv %s693_s7  ;;  %s695_s8 = spop %694 }
 0x208   : > { %v517_v24 = vsel %vm504_vm0, %v516_v22, 0.0  ;;  %v531_v25 = vstv %s695_s8  ;;  %s697_s19 = spop %696 }
 0x209   : > { %v518_v26 = vadd.f32 %v517_v24, %v503_v23  ;;  %v546_v27 = vstv %s697_s19  ;;  %v532_v34 = vsel %vm519_vm1, %v531_v25, 0.0 }
 0x20a   : > { %v547_v29 = vsel %vm534_vm2, %v546_v27, 0.0 }
 0x20b   : > { %v533_v28 = vadd.f32 %v532_v34, %v518_v26 }
 0x20d   : > { %v548_v31 = vadd.f32 %v547_v29, %v533_v28 }
 0x20f   : > { %549 = vst [vmem:[%s184_s13] sm:$0xff] %v548_v31 }
 0x210   : > { %834 = shalt.err (!%p831_p9)
}
 0x211   : > { %698 = dma.vmem_to_hbm [thread:$0]  (%p954_p4), %s564_s12, 128, %s566_s14, %s551_s15  }
 0x212 PF: > { %p704_p10 = scmp.ge.s32.totalorder %s887_s21, 2  ;;  %s577_s29 = sand.u32 1, %s867_s16  }
 0x213   : > { %s578_s30 = scalar_lea.sflag [#allocation9], %s577_s29 }
 0x214   : > { %p701_p11 = pnand %p704_p10, %p961_p8 }
 0x216   : > { %p702_p12 = pneg %p701_p11 }
 0x218   : > { %862 = dma.done.wait (%p702_p12), %s578_s30, 128  }
 0x219   : > { %864 = vsyncadd (%p702_p12), %s578_s30, 4294967168  ;;  %s24_s21 = sadd.s32 1, %s887_s21   ;;  %s1186_s16 = smov %s871_s17 }
 0x21a   : > { %p21_p13 = scmp.ge.s32.totalorder %s24_s21, 8   ;;  %s1187_s17 = smov %s875_s18 }
 0x21b   : > { %s1188_s18 = smov %s967_s28  ;;  %s1189_s19 = smov %s883_s20 }
 0x21c   : > { %s1190_s20 = smov %s1192_s23  ;;  %23 = sbr.rel (!%p21_p13) target bundleno = 10 (0xa), region = 95 }
 0x221   :  { %584 = vsyncpa [#allocation9], 1 }
 0x222   :  { %586 = vsyncpa [#allocation9 + $0x1], 1 }

</bundles_post_ra>
